<compile_context>
chip_gen: v5e
topology: v5e:2x2
jax: 0.10.0
libtpu: 0.0.40
codegen_flags: <defaults>
</compile_context>

<pallas_src>
import jax
import jax.numpy as jnp
from jax import lax
from jax.experimental import pallas as pl
from jax.experimental.pallas import tpu as pltpu


def _round_up(x, m):
    return (x + m - 1) // m * m


def _vmem_budgets():
    """Generation-aware VMEM limit + per-block-set tiling budget."""
    cap = 128 * 1024 * 1024
    try:
        cap = int(getattr(pltpu.get_tpu_info(), "vmem_capacity_bytes", cap))
    except Exception:
        pass
    # v5e/v6e (128 MiB VMEM) -> ~76 MiB limit, ~12.8 MiB block budget;
    # v7x     ( 64 MiB VMEM) -> ~38 MiB limit,  ~6.4 MiB block budget.
    vmem_limit = max(32 * 1024 * 1024, min(cap * 3 // 5, 96 * 1024 * 1024))
    block_budget = max(2 * 1024 * 1024, min(cap // 10, 14 * 1024 * 1024))
    return vmem_limit, block_budget


def _pick_tile_m(m, kp, lp, in_bytes, out_bytes, budget):
    """Largest power-of-two row tile whose footprint (double-buffered lhs/out
    blocks + weight block + f32 accumulator temp) fits the budget."""
    cap_tm = max(8, _round_up(m, 8))
    best, tm = 8, 8
    while tm <= cap_tm:
        lhs = tm * kp * in_bytes
        out = tm * lp * out_bytes
        acc = tm * lp * 4
        wgt = kp * lp * in_bytes
        if 2 * (lhs + out) + 2 * wgt + acc <= budget:
            best = tm
        tm *= 2
    return min(best, cap_tm)


# ---------------------------------------------------------------------------
# Pass 1: one MXU matmul per tile -> per-tile BatchNorm partial sums only.
# ---------------------------------------------------------------------------
def _stats_kernel(lhs_ref, w_ref, stats_ref):
    # lhs_ref:   (TM, Kp)  im2col patches (bf16 / input dtype)
    # w_ref:     (Kp, L)   block-diagonal packed weights
    # stats_ref: (2, L)    row 0 = per-channel sum, row 1 = sum of squares
    acc = jnp.dot(lhs_ref[...], w_ref[...], preferred_element_type=jnp.float32)
    stats_ref[0:1, :] = jnp.sum(acc, axis=0, keepdims=True)
    stats_ref[1:2, :] = jnp.sum(acc * acc, axis=0, keepdims=True)


# ---------------------------------------------------------------------------
# Pass 2: recompute the conv tile (no f32 conv intermediate in HBM) and apply
# the folded BatchNorm affine + SiLU.  Output stays lane-dense (L % 128 == 0).
# ---------------------------------------------------------------------------
def _conv_bn_silu_kernel(lhs_ref, w_ref, scale_ref, shift_ref, o_ref):
    acc = jnp.dot(lhs_ref[...], w_ref[...], preferred_element_type=jnp.float32)
    y = acc * scale_ref[...] + shift_ref[...]
    o_ref[...] = (y * jax.nn.sigmoid(y)).astype(o_ref.dtype)


def cnn_block_forward(x_nchw, w_oihw, gamma, beta, *, stride, padding,
                      groups=1, eps=1e-5, mxu_dtype=jnp.bfloat16):
    N, Cin, H, W = x_nchw.shape
    Cout, Cg, KH, KW = w_oihw.shape
    assert Cg * groups == Cin and Cout % groups == 0
    G = groups
    Cog = Cout // G
    out_dtype = x_nchw.dtype
    # Feed the MXU in bf16 when inputs are f32 (f32 accumulation in the dot).
    mm_dtype = (jnp.dtype(mxu_dtype) if jnp.dtype(x_nchw.dtype).itemsize >= 4
                else jnp.dtype(x_nchw.dtype))

    Hout = (H + 2 * padding - KH) // stride + 1
    Wout = (W + 2 * padding - KW) // stride + 1
    M = N * Hout * Wout

    # Group packing: GP groups share the lane axis via block-diagonal weights.
    GP = min(G, max(1, 128 // Cog))
    NPACK = -(-G // GP)
    GPAD = NPACK * GP
    L = _round_up(GP * Cog, 128)
    Kg = KH * KW * Cg
    Kp = GP * Kg

    vmem_limit, block_budget = _vmem_budgets()
    TM = _pick_tile_m(M, Kp, L, jnp.dtype(mm_dtype).itemsize,
                      jnp.dtype(out_dtype).itemsize, block_budget)
    if NPACK * (-(-M // TM)) < 2 and M > 8:     # keep both v7x TCs fed
        TM = max(8, _round_up(M, 16) // 2)
    Mp = _round_up(M, TM)
    MT = Mp // TM

    # ---- explicit im2col (wrapper): (NPACK, Mp, Kp); K = (group, kh, kw, cin).
    x = jnp.transpose(x_nchw, (0, 2, 3, 1))                      # NHWC
    xp = jnp.pad(x, ((0, 0), (padding, padding), (padding, padding), (0, 0)))
    taps = [xp[:, i:i + stride * (Hout - 1) + 1:stride,
               j:j + stride * (Wout - 1) + 1:stride, :]
            for i in range(KH) for j in range(KW)]
    patches = jnp.stack(taps, axis=3)                            # (N,Ho,Wo,KH*KW,Cin)
    patches = patches.reshape(M, KH * KW, G, Cg)
    patches = jnp.transpose(patches, (2, 0, 1, 3)).reshape(G, M, Kg)
    if GPAD != G:
        patches = jnp.pad(patches, ((0, GPAD - G), (0, 0), (0, 0)))
    if Mp != M:   # zero rows: conv == 0 -> stats unaffected (count stays M)
        patches = jnp.pad(patches, ((0, 0), (0, Mp - M), (0, 0)))
    lhs = patches.reshape(NPACK, GP, Mp, Kg)
    lhs = jnp.transpose(lhs, (0, 2, 1, 3)).reshape(NPACK, Mp, Kp).astype(mm_dtype)

    # ---- block-diagonal packed weights: (NPACK, Kp, L).
    wg = jnp.transpose(w_oihw.reshape(G, Cog, Cg, KH, KW),
                       (0, 3, 4, 2, 1)).reshape(G, Kg, Cog)
    if GPAD != G:
        wg = jnp.pad(wg, ((0, GPAD - G), (0, 0), (0, 0)))
    wg = wg.reshape(NPACK, GP, Kg, Cog)
    eye = jnp.eye(GP, dtype=wg.dtype)
    wblk = jnp.einsum('pgkc,gh->pgkhc', wg, eye).reshape(NPACK, Kp, GP * Cog)
    wblk = jnp.pad(wblk, ((0, 0), (0, 0), (0, L - GP * Cog))).astype(mm_dtype)

    cparams = pltpu.CompilerParams(
        dimension_semantics=("parallel", "parallel"),
        vmem_limit_bytes=vmem_limit)

    # ---- pass 1: BN partial sums only (no conv intermediate written to HBM).
    stats = pl.pallas_call(
        _stats_kernel,
        grid=(NPACK, MT),
        in_specs=[
            pl.BlockSpec((None, TM, Kp), lambda p, m: (p, m, 0)),
            pl.BlockSpec((None, Kp, L), lambda p, m: (p, 0, 0)),
        ],
        out_specs=pl.BlockSpec((None, None, 2, L), lambda p, m: (p, m, 0, 0)),
        out_shape=jax.ShapeDtypeStruct((NPACK, MT, 2, L), jnp.float32),
        compiler_params=cparams,
    )(lhs, wblk)

    # ---- BN finalize on tiny (NPACK, L) vectors: fold gamma/beta.
    count = jnp.float32(M)
    mean = stats[:, :, 0, :].sum(axis=1) / count
    var = jnp.maximum(stats[:, :, 1, :].sum(axis=1) / count - mean * mean, 0.0)
    pad_c = GPAD * Cog - Cout
    gamma_p = jnp.pad(jnp.pad(gamma.astype(jnp.float32), (0, pad_c))
                      .reshape(NPACK, GP * Cog), ((0, 0), (0, L - GP * Cog)))
    beta_p = jnp.pad(jnp.pad(beta.astype(jnp.float32), (0, pad_c))
                     .reshape(NPACK, GP * Cog), ((0, 0), (0, L - GP * Cog)))
    scale2 = gamma_p * lax.rsqrt(var + eps)
    shift2 = beta_p - mean * scale2
    scale = scale2[:, None, :]                                   # (NPACK, 1, L)
    shift = shift2[:, None, :]

    # ---- pass 2: recompute conv tile + folded BN + SiLU, lane-dense output.
    out = pl.pallas_call(
        _conv_bn_silu_kernel,
        grid=(NPACK, MT),
        in_specs=[
            pl.BlockSpec((None, TM, Kp), lambda p, m: (p, m, 0)),
            pl.BlockSpec((None, Kp, L), lambda p, m: (p, 0, 0)),
            pl.BlockSpec((None, 1, L), lambda p, m: (p, 0, 0)),
            pl.BlockSpec((None, 1, L), lambda p, m: (p, 0, 0)),
        ],
        out_specs=pl.BlockSpec((None, TM, L), lambda p, m: (p, m, 0)),
        out_shape=jax.ShapeDtypeStruct((NPACK, Mp, L), out_dtype),
        compiler_params=cparams,
    )(lhs, wblk, scale, shift)

    # ---- unpack lanes -> NCHW, drop group/channel/row padding.
    y = out[:, :M, :GP * Cog].reshape(NPACK, N, Hout, Wout, GP, Cog)
    y = jnp.transpose(y, (1, 0, 4, 5, 2, 3)).reshape(N, GPAD * Cog, Hout, Wout)
    return y[:, :Cout]


def reference_forward(x, w, gamma, beta, *, stride, padding, groups, eps=1e-5):
    # Pure-JAX reference matching PyTorch forward (fresh module -> train-mode BN).
    conv = lax.conv_general_dilated(
        x, w, window_strides=(stride, stride),
        padding=[(padding, padding), (padding, padding)],
        dimension_numbers=("NCHW", "OIHW", "NCHW"),
        feature_group_count=groups)
    mean = jnp.mean(conv, axis=(0, 2, 3), keepdims=True)
    var = jnp.mean(jnp.square(conv - mean), axis=(0, 2, 3), keepdims=True)
    xhat = (conv - mean) / jnp.sqrt(var + eps)
    bn = xhat * gamma.reshape(1, -1, 1, 1) + beta.reshape(1, -1, 1, 1)
    return bn * jax.nn.sigmoid(bn)


if __name__ == "__main__":
    key = jax.random.PRNGKey(0)

    configs = [
        # (N, Cin, H, W, Cout, K, stride, padding, groups)
        (2, 4, 16, 16, 8, 3, 1, 1, 1),     # plain conv (the original example)
        (2, 8, 16, 16, 16, 3, 2, 1, 8),    # grouped + strided (packing path)
    ]
    for idx, (N, Cin, H, W, Cout, K, stride, padding, groups) in enumerate(configs):
        kx, kw, kg, kb, key = jax.random.split(key, 5)
        x = jax.random.normal(kx, (N, Cin, H, W), jnp.float32)
        # Conv2d bias=False; BN affine params (gamma, beta).
        w = jax.random.normal(kw, (Cout, Cin // groups, K, K), jnp.float32) * 0.1
        gamma = 1.0 + 0.1 * jax.random.normal(kg, (Cout,), jnp.float32)
        beta = 0.1 * jax.random.normal(kb, (Cout,), jnp.float32)

        out = cnn_block_forward(x, w, gamma, beta, stride=stride,
                                padding=padding, groups=groups)
        out = jax.block_until_ready(out)

        Hout = (H + 2 * padding - K) // stride + 1
        Wout = (W + 2 * padding - K) // stride + 1
        assert out.shape == (N, Cout, Hout, Wout)

        # Tight check vs a reference on bf16-rounded inputs (kernel feeds the
        # MXU in bf16 with f32 accumulation).
        xb = x.astype(jnp.bfloat16).astype(jnp.float32)
        wb = w.astype(jnp.bfloat16).astype(jnp.float32)
        ref_b = reference_forward(xb, wb, gamma, beta, stride=stride,
                                  padding=padding, groups=groups)
        assert jnp.allclose(out, ref_b, atol=2e-3, rtol=2e-3), (
            idx, float(jnp.max(jnp.abs(out - ref_b))))

        # Loose sanity check vs the full-f32 reference.
        ref_f = reference_forward(x, w, gamma, beta, stride=stride,
                                  padding=padding, groups=groups)
        assert jnp.allclose(out, ref_f, atol=8e-2, rtol=8e-2), (
            idx, float(jnp.max(jnp.abs(out - ref_f))))

    print("KERNEL_OK")
</pallas_src>

<mosaic_0001>
module attributes {stable_mosaic.version = 11 : i64} {
  func.func @_stats_kernel(%arg0: i32, %arg1: i32, %arg2: memref<1x256x36xbf16, #tpu.memory_space<vmem>>, %arg3: memref<1x36x128xbf16, #tpu.memory_space<vmem>>, %arg4: memref<1x1x2x128xf32, #tpu.memory_space<vmem>>) attributes {dimension_semantics = [#tpu.dimension_semantics<parallel>, #tpu.dimension_semantics<parallel>], iteration_bounds = array<i64: 1, 2>, scalar_prefetch = 0 : i64, scratch_operands = 0 : i64, tpu.core_type = #tpu.core_type<tc>, window_params = [{transform_indices = @transform_0, window_bounds = array<i64: 1, 256, 36>}, {transform_indices = @transform_1, window_bounds = array<i64: 1, 36, 128>}, {transform_indices = @transform_2, window_bounds = array<i64: 1, 1, 2, 128>}]} {
    %c0 = arith.constant 0 : index
    %c0_0 = arith.constant 0 : index
    %c0_1 = arith.constant 0 : index
    %0 = vector.load %arg2[%c0, %c0_0, %c0_1] : memref<1x256x36xbf16, #tpu.memory_space<vmem>>, vector<1x256x36xbf16>
    %1 = vector.shape_cast %0 : vector<1x256x36xbf16> to vector<256x36xbf16>
    %c0_2 = arith.constant 0 : index
    %c0_3 = arith.constant 0 : index
    %c0_4 = arith.constant 0 : index
    %2 = vector.load %arg3[%c0_2, %c0_3, %c0_4] : memref<1x36x128xbf16, #tpu.memory_space<vmem>>, vector<1x36x128xbf16>
    %3 = vector.shape_cast %2 : vector<1x36x128xbf16> to vector<36x128xbf16>
    %cst = arith.constant dense<0.000000e+00> : vector<256x128xf32>
    %4 = tpu.matmul %1, %3, %cst {dimension_numbers = #tpu.dot_dimension_numbers<[1], [0], [0], [1], [0, 0, 1, 1], [], []>} : vector<256x36xbf16>, vector<36x128xbf16>, vector<256x128xf32> -> vector<256x128xf32>
    %cst_5 = arith.constant dense<0.000000e+00> : vector<128xf32>
    %5 = vector.multi_reduction <add>, %4, %cst_5 [0] : vector<256x128xf32> to vector<128xf32>
    %6 = vector.shape_cast %5 : vector<128xf32> to vector<1x128xf32>
    %c0_6 = arith.constant 0 : index
    %c0_7 = arith.constant 0 : index
    %c0_8 = arith.constant 0 : index
    %c0_9 = arith.constant 0 : index
    %7 = vector.load %arg4[%c0_6, %c0_7, %c0_8, %c0_9] : memref<1x1x2x128xf32, #tpu.memory_space<vmem>>, vector<1x1x1x128xf32>
    %8 = vector.shape_cast %7 : vector<1x1x1x128xf32> to vector<1x128xf32>
    %9 = vector.shape_cast %6 : vector<1x128xf32> to vector<1x1x1x128xf32>
    tpu.vector_store %arg4[%c0_6, %c0_7, %c0_8, %c0_9], %9 {strides = array<i32>} : memref<1x1x2x128xf32, #tpu.memory_space<vmem>>, vector<1x1x1x128xf32>,
    %10 = arith.mulf %4, %4 : vector<256x128xf32>
    %cst_10 = arith.constant dense<0.000000e+00> : vector<128xf32>
    %11 = vector.multi_reduction <add>, %10, %cst_10 [0] : vector<256x128xf32> to vector<128xf32>
    %12 = vector.shape_cast %11 : vector<128xf32> to vector<1x128xf32>
    %c0_11 = arith.constant 0 : index
    %c0_12 = arith.constant 0 : index
    %c1 = arith.constant 1 : index
    %c0_13 = arith.constant 0 : index
    %13 = vector.load %arg4[%c0_11, %c0_12, %c1, %c0_13] : memref<1x1x2x128xf32, #tpu.memory_space<vmem>>, vector<1x1x1x128xf32>
    %14 = vector.shape_cast %13 : vector<1x1x1x128xf32> to vector<1x128xf32>
    %15 = vector.shape_cast %12 : vector<1x128xf32> to vector<1x1x1x128xf32>
    tpu.vector_store %arg4[%c0_11, %c0_12, %c1, %c0_13], %15 {strides = array<i32>} : memref<1x1x2x128xf32, #tpu.memory_space<vmem>>, vector<1x1x1x128xf32>,
    return
  }
  func.func @transform_0(%arg0: i32, %arg1: i32) -> (i32, i32, i32) {
    %c0_i32 = arith.constant 0 : i32
    %c0_i32_0 = arith.constant 0 : i32
    return %arg0, %arg1, %c0_i32 : i32, i32, i32
  }
  func.func @transform_1(%arg0: i32, %arg1: i32) -> (i32, i32, i32) {
    %c0_i32 = arith.constant 0 : i32
    %c0_i32_0 = arith.constant 0 : i32
    %c0_i32_1 = arith.constant 0 : i32
    return %arg0, %c0_i32, %c0_i32_0 : i32, i32, i32
  }
  func.func @transform_2(%arg0: i32, %arg1: i32) -> (i32, i32, i32, i32) {
    %c0_i32 = arith.constant 0 : i32
    %c0_i32_0 = arith.constant 0 : i32
    %c0_i32_1 = arith.constant 0 : i32
    return %arg0, %arg1, %c0_i32, %c0_i32_0 : i32, i32, i32, i32
  }
}

</mosaic_0001>

<bundles_post_ra>
// kernel: tpu_custom_call.1
= control target key start
LH: loop header
LB: loop body
LE: loop exit
PB: predicated region body
PF: predicated region fallthrough
CT: control target
= control target key end

     0   :  { %7 = vsyncpa [#allocation3], 0  ;;  %s1135_s0 = inlined_call_operand.vmem [shape: bf16[1,512,36], index: 0, kind: input, shape index: {}]   ;;  %s1136_s1 = inlined_call_operand.vmem [shape: bf16[1,36,128], index: 1, kind: input, shape index: {}]   ;;  %s1137_s2 = inlined_call_operand.hbm [shape: f32[1,2,2,128], index: 2, kind: output, shape index: {}]  }
   0x1   :  { %9 = vsyncpa [#allocation3 + $0x1], 0  ;;  %s961_s9 = smov 0   ;;  %s963_s10 = smov 0  }
   0x2   :  { %s965_s11 = smov 0   ;;  %s967_s12 = smov 0  }
   0x3   :  { %s969_s13 = smov 0   ;;  %s971_s14 = smov 0  }
   0x4 LB: > { %s683_s15 = sadd.s32 4294967295, %s944_s14   ;;  %s684_s16 = sadd.s32 4294967294, %s944_s14   ;;  %s944_s14 = sphi %s971_s14, %s15_s14   ;;  %s940_s13 = sphi %s969_s13, %s1144_s13   ;;  %s936_s12 = sphi %s967_s12, %s1143_s12   ;;  %s932_s11 = sphi %s965_s11, %s1142_s11   ;;  %s928_s10 = sphi %s963_s10, %s1141_s10   ;;  %s924_s9 = sphi %s961_s9, %s1140_s9  }
   0x5   : > { %s24_s17 = sadd.s32 1, %s940_s13  ;;  %s90_s18 = sadd.s32 1, %s932_s11 }
   0x6   : > { %p25_p0 = scmp.ge.s32.totalorder %s24_s17, 2  ;;  %p100_p1 = scmp.ne.s32.totalorder %s932_s11, %s928_s10 }
   0x7   : > { %p101_p2 = scmp.eq.s32.totalorder %s683_s15, 1  ;;  %p106_p3 = scmp.ne.s32.totalorder %s928_s10, %s924_s9 }
   0x8   : > { %s1146_s17 = smov (%p25_p0, %s24_s17), 0  ;;  %p107_p5 = scmp.eq.s32.totalorder %s684_s16, 1 }
   0x9   : > { %p1001_p4 = por %p101_p2, %p100_p1  ;;  %s86_s20 = ssub.s32 %s940_s13, %s1146_s17 }
   0xa   : > { %p688_p6 = scmp.ge.s32.totalorder %s944_s14, 1  ;;  %p88_p7 = scmp.eq.s32.totalorder %s86_s20, 0 }
   0xb   : > { %p1008_p8 = por %p107_p5, %p106_p3  ;;  %p146_p9 = scmp.lt.s32.totalorder %s944_s14, 3 }
   0xc   : > { %s1014_s22 = scalar_select %p88_p7, %s932_s11, %s90_s18  }
   0xd   : > { %p147_p10 = pnand %p688_p6, %p146_p9 }
   0xe   : > { %s690_s25 = sshll.u32 (!%p147_p10), %s936_s12, 5  ;;  %s174_s6 = sand.u32 (!%p147_p10), 1, %s928_s10  }
   0xf   : > { %150 = sbr.rel (%p147_p10) target bundleno = 286 (0x11e), region = 28  ;;  %p180_p11 = scmp.lt.s32.totalorder (!%p147_p10), %s690_s25, 63 }
  0x10   : > { %s689_s7 = sshll.u32 (!%p147_p10), %s174_s6, 1  ;;  %s781_s8 = sshll.u32 (!%p147_p10), %s936_s12, 1 }
  0x11   : > { %s588_s18 = scalar_lea.hbm (!%p147_p10), %s1137_s2, %s781_s8  ;;  %s176_s20 = scalar_lea.vmem (!%p147_p10), [#allocation2], %s689_s7 }
  0x12   : > { %s590_s23 = sshll.u32 (!%p147_p10), %s176_s20, 4  ;;  %s592_s24 = sshll.u32 (!%p147_p10), %s588_s18, 4  ;;  %s591_s23 = int_to_ptr.vmem [resolvable:$true] %s590_s23  ;;  %s593_s24 = int_to_ptr.hbm [resolvable:$true] %s592_s24 }
  0x13   : > { %s576_s12 = scalar_lea.sflag (!%p147_p10), [#allocation3], %s174_s6  ;;  %s886_s29 = scalar_lea.hbm (!%p147_p10), %s1137_s2, 4 }
  0x14   : > { %v229_v0 = vld [vmem:[%s1136_s1 + $0x10] sm:$0x3]  ;;  %vm374_vm0 = vcmask 1041408   ;;  %s1148_s25 = smov (!%p180_p11, %s690_s25), 63  ;;  %v801_v4 = vld [vmem:[%s1136_s1 + $0x8] sm:$0xff]  ;;  %v800_v5 = vld [vmem:[%s1136_s1] sm:$0xff] }
  0x15   : > { %v319_v1 = vunpack.c.l.b16 %v229_v0  ;;  %s691_s28 = sshll.u32 %s1148_s25, 2  ;;  %vm325_vm1 = vcmask 293888   ;;  %s880_s25 = sshra.s32 %s593_s24, 4  ;;  %s881_s25 = int_to_ptr.hbm [resolvable:$true] %s880_s25 }
  0x16   : > { %s1029_s5 = scalar_lea.vmem %s1135_s0, %s691_s28  ;;  %s882_s26 = scalar_lea.hbm %s881_s25, 2 }
  0x17   : > { %v322_v2 = vpack.c.b16 %v319_v1, %v319_v1  ;;  %v784_v6 = vld [vmem:[%s1029_s5] sm:$0xff]  ;;  %v785_v10 = vld [vmem:[%s1029_s5 + $0x8] sm:$0xff]  ;;  %v786_v14 = vld [vmem:[%s1029_s5 + $0x10] sm:$0xff]  ;;  %p883_p12 = scmp.ne.s32.totalorder %s881_s25, %s882_s26  ;;  %p887_p1 = scmp.lt.s32.totalorder %s881_s25, %s1137_s2 }
  0x18   : > { %v788_v7 = vld [vmem:[%s1029_s5 + $0x20] sm:$0xff]  ;;  %v789_v11 = vld [vmem:[%s1029_s5 + $0x28] sm:$0xff]  ;;  %v790_v15 = vld [vmem:[%s1029_s5 + $0x30] sm:$0xff]  ;;  %p888_p2 = scmp.lt.s32.totalorder %s886_s29, %s882_s26 }
  0x19   : > { %v376_v3 = vsel %vm374_vm0, %v322_v2, 0  ;;  %v792_v8 = vld [vmem:[%s1029_s5 + $0x40] sm:$0xff]  ;;  %v793_v12 = vld [vmem:[%s1029_s5 + $0x48] sm:$0xff]  ;;  %v794_v16 = vld [vmem:[%s1029_s5 + $0x50] sm:$0xff]  ;;  %p884_p13 = pnand %p883_p12, %p1001_p4 }
  0x1a   : > { %383 = vmatpush.bf16.msra.mxu0 %v376_v3  ;;  %802 = vmatpush.bf16.msra.mxu1 %v376_v3  ;;  %v796_v9 = vld [vmem:[%s1029_s5 + $0x60] sm:$0xff]  ;;  %v797_v13 = vld [vmem:[%s1029_s5 + $0x68] sm:$0xff]  ;;  %v798_v17 = vld [vmem:[%s1029_s5 + $0x70] sm:$0xff]  ;;  %p889_p3 = por %p888_p2, %p887_p1 }
  0x1b   : > { %803 = vmatpush.bf16.msra.mxu2 %v376_v3  ;;  %804 = vmatpush.bf16.msra.mxu3 %v376_v3  ;;  %v787_v18 = vld [vmem:[%s1029_s5 + $0x18] sm:$0xff]  ;;  %p885_p0 = pneg %p884_p13 }
  0x1c   : > { %v791_v19 = vld [vmem:[%s1029_s5 + $0x38] sm:$0xff] }
  0x1d   : > { %v795_v20 = vld [vmem:[%s1029_s5 + $0x58] sm:$0xff]  ;;  %p890_p5 = pnand %p889_p3, %p885_p0 }
  0x1e   : > { %384 = vmatpush.bf16.msra.mxu0 %v801_v4  ;;  %805 = vmatpush.bf16.msra.mxu1 %v801_v4  ;;  %v799_v21 = vld [vmem:[%s1029_s5 + $0x78] sm:$0xff] }
  0x1f   : > { %806 = vmatpush.bf16.msra.mxu2 %v801_v4  ;;  %807 = vmatpush.bf16.msra.mxu3 %v801_v4 }
  0x22   : > { %385 = vmatpush.bf16.msra.mxu0 %v800_v5  ;;  %808 = vmatpush.bf16.msra.mxu1 %v800_v5 }
  0x23   : > { %809 = vmatpush.bf16.msra.mxu2 %v800_v5  ;;  %810 = vmatpush.bf16.msra.mxu3 %v800_v5 }
  0x25   : > { %764 = vmatmul.msk.bf16.vlgmr.msra.gmra.mxu0 %vm325_vm1, %v784_v6  ;;  %768 = vmatmul.msk.bf16.vlgmr.msra.gmra.mxu1 %vm325_vm1, %v788_v7 }
  0x26   : > { %772 = vmatmul.msk.bf16.vlgmr.msra.gmra.mxu2 %vm325_vm1, %v792_v8  ;;  %776 = vmatmul.msk.bf16.vlgmr.msra.gmra.mxu3 %vm325_vm1, %v796_v9 }
  0x35   : > { %765 = vmatmul.msk.bf16.gmra.mxu0 %vm325_vm1, %v785_v10  ;;  %769 = vmatmul.msk.bf16.gmra.mxu1 %vm325_vm1, %v789_v11 }
  0x36   : > { %773 = vmatmul.msk.bf16.gmra.mxu2 %vm325_vm1, %v793_v12  ;;  %777 = vmatmul.msk.bf16.gmra.mxu3 %vm325_vm1, %v797_v13 }
  0x45   : > { %766 = vmatmul.msk.bf16.gmra.mxu0 %vm325_vm1, %v786_v14  ;;  %770 = vmatmul.msk.bf16.gmra.mxu1 %vm325_vm1, %v790_v15 }
  0x46   : > { %774 = vmatmul.msk.bf16.gmra.mxu2 %vm325_vm1, %v794_v16  ;;  %778 = vmatmul.msk.bf16.gmra.mxu3 %vm325_vm1, %v798_v17 }
  0x55   : > { %767 = vmatmul.msk.bf16.gmra.mxu0 %vm325_vm1, %v787_v18  ;;  %771 = vmatmul.msk.bf16.gmra.mxu1 %vm325_vm1, %v791_v19 }
  0x56   : > { %775 = vmatmul.msk.bf16.gmra.mxu2 %vm325_vm1, %v795_v20  ;;  %779 = vmatmul.msk.bf16.gmra.mxu3 %vm325_vm1, %v799_v21 }
  0xa2   : > { %v387_v22 = vpop.f32.mrf.mxu0  ;;  %v407_v23 = vpop.f32.mrf.mxu1 }
  0xa3   : > { %v505_v39 = vmul.f32 %v387_v22, %v387_v22  ;;  %v513_v1 = vmul.f32 %v407_v23, %v407_v23 }
  0xa9   : > { %v1063_v27 = vpop.f32.mrf.mxu2  ;;  %v1067_v33 = vpop.f32.mrf.mxu3 }
  0xaa   : > { %v389_v24 = vpop.f32.mrf.mxu0  ;;  %v409_v25 = vpop.f32.mrf.mxu1 }
  0xab   : > { %v506_v38 = vmul.f32 %v389_v24, %v389_v24  ;;  %v467_v40 = vadd.f32 %v389_v24, %v387_v22  ;;  %v514_v5 = vmul.f32 %v409_v25, %v409_v25 }
  0xad   : > { %v537_v43 = vadd.f32 %v506_v38, %v505_v39 }
  0xb1   : > { %v1065_v30 = vpop.f32.mrf.mxu2  ;;  %v1071_v37 = vpop.f32.mrf.mxu3 }
  0xb2   : > { %v392_v26 = vpop.f32.mrf.mxu0  ;;  %v412_v28 = vpop.f32.mrf.mxu1 }
  0xb3   : > { %v507_v41 = vmul.f32 %v392_v26, %v392_v26  ;;  %v468_v44 = vadd.f32 %v467_v40, %v392_v26  ;;  %v515_v9 = vmul.f32 %v412_v28, %v412_v28 }
  0xb5   : > { %v538_v47 = vadd.f32 %v537_v43, %v507_v41 }
  0xb9   : > { %v1069_v34 = vpop.f32.mrf.mxu2  ;;  %v1075_v54 = vpop.f32.mrf.mxu3 }
  0xba   : > { %v394_v29 = vpop.f32.mrf.mxu0  ;;  %v414_v31 = vpop.f32.mrf.mxu1  ;;  %v523_v43 = vmul.f32 %v1069_v34, %v1069_v34 }
  0xbb   : > { %v508_v45 = vmul.f32 %v394_v29, %v394_v29  ;;  %v469_v48 = vadd.f32 %v468_v44, %v394_v29  ;;  %v516_v12 = vmul.f32 %v414_v31, %v414_v31 }
  0xbd   : > { %v539_v51 = vadd.f32 %v538_v47, %v508_v45 }
  0xc1   : > { %v1073_v42 = vpop.f32.mrf.mxu2  ;;  %v454_v8 = vpop.f32.mrf.mxu3 }
  0xc2   : > { %v397_v32 = vpop.f32.mrf.mxu0  ;;  %v417_v36 = vpop.f32.mrf.mxu1 }
  0xc3   : > { %v509_v49 = vmul.f32 %v397_v32, %v397_v32  ;;  %v470_v52 = vadd.f32 %v469_v48, %v397_v32  ;;  %v517_v16 = vmul.f32 %v417_v36, %v417_v36 }
  0xc5   : > { %v540_v55 = vadd.f32 %v539_v51, %v509_v49 }
  0xc9   : > { %v437_v61 = vpop.f32.mrf.mxu2 }
  0xca   : > { %v399_v35 = vpop.f32.mrf.mxu0  ;;  %v419_v50 = vpop.f32.mrf.mxu1  ;;  %v525_v49 = vmul.f32 %v437_v61, %v437_v61 }
  0xcb   : > { %v510_v53 = vmul.f32 %v399_v35, %v399_v35  ;;  %v471_v56 = vadd.f32 %v470_v52, %v399_v35  ;;  %v518_v19 = vmul.f32 %v419_v50, %v419_v50 }
  0xcd   : > { %v541_v58 = vadd.f32 %v540_v55, %v510_v53 }
  0xd1   : > { %v439_v15 = vpop.f32.mrf.mxu2 }
  0xd2   : > { %v402_v46 = vpop.f32.mrf.mxu0  ;;  %v422_v4 = vpop.f32.mrf.mxu1  ;;  %v526_v53 = vmul.f32 %v439_v15, %v439_v15 }
  0xd3   : > { %v511_v57 = vmul.f32 %v402_v46, %v402_v46  ;;  %v472_v59 = vadd.f32 %v471_v56, %v402_v46  ;;  %v519_v24 = vmul.f32 %v422_v4, %v422_v4  ;;  %v524_v46 = vmul.f32 %v1073_v42, %v1073_v42 }
  0xd5   : > { %v542_v62 = vadd.f32 %v541_v58, %v511_v57 }
  0xd9   : > { %v442_v39 = vpop.f32.mrf.mxu2 }
  0xda   : > { %v404_v60 = vpop.f32.mrf.mxu0  ;;  %v424_v22 = vpop.f32.mrf.mxu1  ;;  %v527_v58 = vmul.f32 %v442_v39, %v442_v39 }
  0xdb   : > { %v473_v63 = vadd.f32 %v472_v59, %v404_v60  ;;  %v512_v0 = vmul.f32 %v404_v60, %v404_v60  ;;  %v520_v35 = vmul.f32 %v424_v22, %v424_v22 }
  0xdd   : > { %v474_v2 = vadd.f32 %v473_v63, %v407_v23  ;;  %v543_v3 = vadd.f32 %v542_v62, %v512_v0  ;;  %v529_v62 = vmul.f32 %v1067_v33, %v1067_v33 }
  0xdf   : > { %v475_v6 = vadd.f32 %v474_v2, %v409_v25  ;;  %v544_v7 = vadd.f32 %v543_v3, %v513_v1  ;;  %v457_v25 = vpop.f32.mrf.mxu3  ;;  %v531_v3 = vmul.f32 %v1075_v54, %v1075_v54 }
  0xe1   : > { %v476_v10 = vadd.f32 %v475_v6, %v412_v28  ;;  %v545_v11 = vadd.f32 %v544_v7, %v514_v5  ;;  %v521_v28 = vmul.f32 %v1063_v27, %v1063_v27  ;;  %v444_v55 = vpop.f32.mrf.mxu2  ;;  %v532_v6 = vmul.f32 %v454_v8, %v454_v8 }
  0xe2   : > { %v528_v60 = vmul.f32 %v444_v55, %v444_v55 }
  0xe3   : > { %v546_v13 = vadd.f32 %v545_v11, %v515_v9  ;;  %v477_v14 = vadd.f32 %v476_v10, %v414_v31  ;;  %v533_v10 = vmul.f32 %v457_v25, %v457_v25 }
  0xe5   : > { %v478_v17 = vadd.f32 %v477_v14, %v417_v36  ;;  %v547_v18 = vadd.f32 %v546_v13, %v516_v12  ;;  %v522_v36 = vmul.f32 %v1065_v30, %v1065_v30 }
  0xe7   : > { %v479_v20 = vadd.f32 %v478_v17, %v419_v50  ;;  %v548_v21 = vadd.f32 %v547_v18, %v517_v16  ;;  %v459_v48 = vpop.f32.mrf.mxu3 }
  0xe8   : > { %v534_v13 = vmul.f32 %v459_v48, %v459_v48 }
  0xe9   : > { %v480_v23 = vadd.f32 %v479_v20, %v422_v4  ;;  %v549_v26 = vadd.f32 %v548_v21, %v518_v19 }
  0xeb   : > { %v550_v29 = vadd.f32 %v549_v26, %v519_v24  ;;  %v481_v32 = vadd.f32 %v480_v23, %v424_v22 }
  0xed   : > { %v482_v31 = vadd.f32 %v481_v32, %v1063_v27  ;;  %v551_v38 = vadd.f32 %v550_v29, %v520_v35 }
  0xef   : > { %v483_v40 = vadd.f32 %v482_v31, %v1065_v30  ;;  %v552_v41 = vadd.f32 %v551_v38, %v521_v28  ;;  %v462_v0 = vpop.f32.mrf.mxu3 }
  0xf0   : > { %v535_v17 = vmul.f32 %v462_v0, %v462_v0 }
  0xf1   : > { %v484_v44 = vadd.f32 %v483_v40, %v1069_v34  ;;  %v553_v45 = vadd.f32 %v552_v41, %v522_v36 }
  0xf3   : > { %v554_v47 = vadd.f32 %v553_v45, %v523_v43  ;;  %v485_v27 = vadd.f32 %v484_v44, %v1073_v42 }
  0xf5   : > { %v486_v50 = vadd.f32 %v485_v27, %v437_v61  ;;  %v555_v51 = vadd.f32 %v554_v47, %v524_v46  ;;  %v530_v61 = vmul.f32 %v1071_v37, %v1071_v37 }
  0xf7   : > { %v487_v52 = vadd.f32 %v486_v50, %v439_v15  ;;  %v556_v30 = vadd.f32 %v555_v51, %v525_v49  ;;  %v464_v15 = vpop.f32.mrf.mxu3 }
  0xf8   : > { %v536_v20 = vmul.f32 %v464_v15, %v464_v15 }
  0xf9   : > { %v557_v56 = vadd.f32 %v556_v30, %v526_v53  ;;  %v488_v57 = vadd.f32 %v487_v52, %v442_v39 }
  0xfb   : > { %v558_v59 = vadd.f32 %v557_v56, %v527_v58  ;;  %v489_v34 = vadd.f32 %v488_v57, %v444_v55 }
  0xfd   : > { %v490_v63 = vadd.f32 %v489_v34, %v1067_v33  ;;  %v559_v42 = vadd.f32 %v558_v59, %v528_v60 }
  0xff   : > { %v491_v1 = vadd.f32 %v490_v63, %v1071_v37  ;;  %v560_v2 = vadd.f32 %v559_v42, %v529_v62 }
 0x101   : > { %v492_v4 = vadd.f32 %v491_v1, %v1075_v54  ;;  %v561_v5 = vadd.f32 %v560_v2, %v530_v61 }
 0x103   : > { %v562_v7 = vadd.f32 %v561_v5, %v531_v3  ;;  %v493_v9 = vadd.f32 %v492_v4, %v454_v8 }
 0x105   : > { %v494_v33 = vadd.f32 %v493_v9, %v457_v25  ;;  %v563_v11 = vadd.f32 %v562_v7, %v532_v6 }
 0x107   : > { %v495_v12 = vadd.f32 %v494_v33, %v459_v48  ;;  %v564_v14 = vadd.f32 %v563_v11, %v533_v10 }
 0x109   : > { %v565_v37 = vadd.f32 %v564_v14, %v534_v13  ;;  %v496_v16 = vadd.f32 %v495_v12, %v462_v0 }
 0x10b   : > { %v566_v18 = vadd.f32 %v565_v37, %v535_v17  ;;  %v497_v19 = vadd.f32 %v496_v16, %v464_v15 }
 0x10d   : > { %v498_v54 = vrot.slane %v497_v19, 4  ;;  %v567_v21 = vadd.f32 %v566_v18, %v536_v20 }
 0x10f   : > { %v499_v22 = vadd.f32 %v498_v54, %v497_v19  ;;  %v568_v8 = vrot.slane %v567_v21, 4 }
 0x111   : > { %v500_v23 = vrot.slane %v499_v22, 2  ;;  %v569_v24 = vadd.f32 %v568_v8, %v567_v21 }
 0x113   : > { %v501_v26 = vadd.f32 %v500_v23, %v499_v22  ;;  %v570_v25 = vrot.slane %v569_v24, 2 }
 0x115   : > { %v502_v29 = vrot.slane %v501_v26, 1  ;;  %v571_v32 = vadd.f32 %v570_v25, %v569_v24 }
 0x117   : > { %v503_v35 = vadd.f32 %v502_v29, %v501_v26  ;;  %v572_v28 = vrot.slane %v571_v32, 1 }
 0x119   : > { %504 = vst [vmem:[%s176_s20] sm:$0x1] %v503_v35  ;;  %v573_v31 = vadd.f32 %v572_v28, %v571_v32 }
 0x11b   : > { %574 = vst [vmem:[%s176_s20 + $0x1] sm:$0x1] %v573_v31 }
 0x11c   : > { %893 = shalt.err (!%p890_p5)
}
 0x11d   : > { %811 = dma.vmem_to_hbm [thread:$0]  (%p1001_p4), %s591_s23, 32, %s593_s24, %s576_s12  }
 0x11e PF: > { %p817_p6 = scmp.ge.s32.totalorder %s944_s14, 2  ;;  %s604_s4 = sand.u32 1, %s924_s9  }
 0x11f   : > { %s605_s5 = scalar_lea.sflag [#allocation3], %s604_s4 }
 0x120   : > { %p814_p7 = pnand %p817_p6, %p1008_p8 }
 0x122   : > { %p815_p9 = pneg %p814_p7 }
 0x124   : > { %919 = dma.done.wait (%p815_p9), %s605_s5, 32  }
 0x125   : > { %921 = vsyncadd (%p815_p9), %s605_s5, 4294967264  ;;  %s15_s14 = sadd.s32 1, %s944_s14   ;;  %s1140_s9 = smov %s928_s10 }
 0x126   : > { %p12_p10 = scmp.ge.s32.totalorder %s15_s14, 4   ;;  %s1141_s10 = smov %s932_s11 }
 0x127   : > { %s1142_s11 = smov %s1014_s22  ;;  %s1143_s12 = smov %s940_s13 }
 0x128   : > { %s1144_s13 = smov %s1146_s17  ;;  %14 = sbr.rel (!%p12_p10) target bundleno = 4 (0x4), region = 66 }
 0x12d   :  { %611 = vsyncpa [#allocation3], 1 }
 0x12e   :  { %613 = vsyncpa [#allocation3 + $0x1], 1 }

</bundles_post_ra>
